<compile_context>
chip_gen: v7x
topology: tpu7x:2x2x1
jax: 0.10.0
libtpu: 0.0.40
codegen_flags: <defaults>
</compile_context>

<pallas_src>
import math
import functools

import jax
import jax.numpy as jnp
from jax.experimental import pallas as pl
from jax.experimental.pallas import tpu as pltpu


# ----------------------------- tiled matmul --------------------------------

def _matmul_kernel(x_ref, w_ref, o_ref, acc_ref):
    @pl.when(pl.program_id(2) == 0)
    def _():
        acc_ref[...] = jnp.zeros_like(acc_ref)

    acc_ref[...] += jnp.dot(x_ref[...], w_ref[...],
                            preferred_element_type=jnp.float32)

    @pl.when(pl.program_id(2) == pl.num_programs(2) - 1)
    def _():
        o_ref[...] = acc_ref[...].astype(o_ref.dtype)


def _pick_tile(n, candidates):
    for c in candidates:
        if n % c == 0:
            return c
    return n  # fall back to the full dimension (always a legal block)


def pallas_matmul(x, w, out_dtype=None):
    """y = x @ w, tiled over (M, N, K) with an f32 VMEM accumulator."""
    M, K = x.shape
    K2, N = w.shape
    assert K == K2
    out_dtype = x.dtype if out_dtype is None else out_dtype
    tm = _pick_tile(M, (512, 256, 128))
    tn = _pick_tile(N, (512, 256, 128))
    tk = _pick_tile(K, (1024, 512, 256, 128))
    return pl.pallas_call(
        _matmul_kernel,
        out_shape=jax.ShapeDtypeStruct((M, N), out_dtype),
        grid=(M // tm, N // tn, K // tk),
        in_specs=[pl.BlockSpec((tm, tk), lambda i, j, k: (i, k)),
                  pl.BlockSpec((tk, tn), lambda i, j, k: (k, j))],
        out_specs=pl.BlockSpec((tm, tn), lambda i, j, k: (i, j)),
        scratch_shapes=[pltpu.VMEM((tm, tn), jnp.float32)],
        compiler_params=pltpu.CompilerParams(
            dimension_semantics=("parallel", "parallel", "arbitrary")),
    )(x, w)


# --------------------------- flash attention kernel -------------------------

def _flash_attn_kernel(q_ref, k_ref, v_ref, cosq_ref, sinq_ref, cosk_ref,
                       sink_ref, o_ref, qrot_ref, m_ref, l_ref, acc_ref,
                       *, scale, n_rep, head_dim, tq, tk, compute_dtype):
    qi = pl.program_id(1)
    kb = pl.program_id(2)
    d2 = head_dim // 2

    # ---- once per (batch, kv-group, query-tile): init state + Q-side RoPE ---
    @pl.when(kb == 0)
    def _init():
        m_ref[...] = jnp.full(m_ref.shape, -jnp.inf, jnp.float32)
        l_ref[...] = jnp.zeros_like(l_ref)
        acc_ref[...] = jnp.zeros_like(acc_ref)
        cq = cosq_ref[...]                      # (tq, head_dim)   [c | c]
        sq = sinq_ref[...]                      # (tq, head_dim)   [-s | s]
        q = q_ref[...].astype(jnp.float32)      # (tq, n_rep*head_dim)
        # per-head swap of the [even | odd] halves
        swap = jnp.concatenate(
            [q[:, r * head_dim + off:r * head_dim + off + d2]
             for r in range(n_rep) for off in (d2, 0)], axis=-1)
        cq_full = jnp.tile(cq, (1, n_rep))
        sq_full = jnp.tile(sq, (1, n_rep))
        qrot_ref[...] = ((q * cq_full + swap * sq_full)
                         * scale).astype(compute_dtype)

    # ---- skip key blocks entirely in the causal future of this query tile ---
    q_last = (qi + 1) * tq - 1

    @pl.when(kb * tk <= q_last)
    def _compute():
        ck = cosk_ref[...]                      # (tk, head_dim)
        sk = sink_ref[...]
        k = k_ref[...].astype(jnp.float32)      # (tk, head_dim)
        k_swap = jnp.concatenate([k[:, d2:], k[:, :d2]], axis=-1)
        k_rot = (k * ck + k_swap * sk).astype(compute_dtype)
        v = v_ref[...].astype(compute_dtype)    # (tk, head_dim)

        # Causal mask for this (query tile, key block), generated in-kernel.
        q_pos = qi * tq + jax.lax.broadcasted_iota(jnp.int32, (tq, tk), 0)
        k_pos = kb * tk + jax.lax.broadcasted_iota(jnp.int32, (tq, tk), 1)
        causal = q_pos >= k_pos
        # NOTE: -1e30 masking is safe because key block 0 (always visited)
        # has an unmasked entry for every query row when start_pos == 0.

        for r in range(n_rep):
            lo, hi = r * head_dim, (r + 1) * head_dim
            s = jax.lax.dot_general(
                qrot_ref[:, lo:hi], k_rot, (((1,), (1,)), ((), ())),
                preferred_element_type=jnp.float32)             # (tq, tk)
            s = jnp.where(causal, s, -1e30)
            m_prev = m_ref[r]                                    # (tq, 1)
            m_new = jnp.maximum(m_prev, jnp.max(s, axis=-1, keepdims=True))
            alpha = jnp.exp(m_prev - m_new)
            p = jnp.exp(s - m_new)
            l_ref[r] = alpha * l_ref[r] + jnp.sum(p, axis=-1, keepdims=True)
            acc_ref[:, lo:hi] = alpha * acc_ref[:, lo:hi] + jnp.dot(
                p.astype(compute_dtype), v, preferred_element_type=jnp.float32)
            m_ref[r] = m_new

    # ---- after the last key block: normalize and emit a lane-dense slab -----
    @pl.when(kb == pl.num_programs(2) - 1)
    def _finalize():
        outs = []
        for r in range(n_rep):
            inv_l = pl.reciprocal(l_ref[r], approx=False)        # (tq, 1)
            outs.append(acc_ref[:, r * head_dim:(r + 1) * head_dim] * inv_l)
        o_ref[...] = jnp.concatenate(outs, axis=-1).astype(o_ref.dtype)


# ------------------------ one-time parameter preparation --------------------

def precompute_freqs(head_dim, max_seq_len, theta=10000.0):
    inv = 1.0 / (theta ** (jnp.arange(0, head_dim, 2, dtype=jnp.float32) / head_dim))
    t = jnp.arange(max_seq_len, dtype=jnp.float32)
    angles = jnp.outer(t, inv)                      # (max_seq_len, head_dim//2)
    return jnp.cos(angles), jnp.sin(angles), jnp.exp(1j * angles).astype(jnp.complex64)


def prepare_attention_params(params, *, n_heads, n_kv_heads, max_seq_len,
                             theta=10000.0, compute_dtype=jnp.bfloat16):
    """One-time prep: RoPE row permutation, QKV fusion, casts, cos/sin tables."""
    dim = params["wq"].shape[1]
    head_dim = dim // n_heads
    assert head_dim % 2 == 0
    cos, sin, _ = precompute_freqs(head_dim, max_seq_len, theta)

    # Permute wq/wk rows so each head emits [even dims | odd dims] contiguously
    # (q.k dot products are invariant to a permutation applied to both sides;
    # wv/wo untouched so the output layout matches PyTorch exactly).
    d_perm = jnp.concatenate([jnp.arange(0, head_dim, 2),
                              jnp.arange(1, head_dim, 2)])

    def permute_rows(w, nh):
        perm = (jnp.arange(nh)[:, None] * head_dim + d_perm[None, :]).reshape(-1)
        return w[perm]

    w_qkv = jnp.concatenate([permute_rows(params["wq"], n_heads),
                             permute_rows(params["wk"], n_kv_heads),
                             params["wv"]], axis=0).T.astype(compute_dtype)
    wo_t = params["wo"].T.astype(compute_dtype)

    cos_full = jnp.concatenate([cos, cos], axis=-1).astype(jnp.float32)   # [c | c]
    sin_signed = jnp.concatenate([-sin, sin], axis=-1).astype(jnp.float32)  # [-s | s]
    return dict(w_qkv=w_qkv, wo_t=wo_t, cos_full=cos_full,
                sin_signed=sin_signed, n_heads=n_heads, n_kv_heads=n_kv_heads,
                head_dim=head_dim, compute_dtype=compute_dtype)


# ----------------------------- module wrapper ------------------------------

def attention_forward(x, prep):
    """Forward pass of the Llama Attention module (start_pos=0, causal mask)."""
    n_heads = prep["n_heads"]
    n_kv = prep["n_kv_heads"]
    head_dim = prep["head_dim"]
    compute_dtype = prep["compute_dtype"]
    n_rep = n_heads // n_kv
    B, S, dim = x.shape
    assert dim == n_heads * head_dim
    scale = 1.0 / math.sqrt(head_dim)
    qw, kvw = n_heads * head_dim, n_kv * head_dim
    gq = n_rep * head_dim                       # query width per kv group

    # Fused QKV projection -> (B*S, qw + 2*kvw) in compute_dtype (bf16 prod path).
    qkv = pallas_matmul(x.reshape(B * S, dim).astype(compute_dtype),
                        prep["w_qkv"], out_dtype=compute_dtype)
    qkv3 = qkv.reshape(B, S, qw + 2 * kvw)

    # K/V as (B, S, n_kv, head_dim): plain column slices + free reshapes
    # (no transposes anywhere).
    xk = qkv3[:, :, qw:qw + kvw].reshape(B, S, n_kv, head_dim)
    xv = qkv3[:, :, qw + kvw:].reshape(B, S, n_kv, head_dim)

    tq = _pick_tile(S, (256, 128))              # query tile
    tk = _pick_tile(S, (512, 256, 128))         # flash key block

    # Q is read directly out of the fused qkv buffer when the per-group width
    # is lane aligned; otherwise fall back to a column slice + free reshape.
    if gq % 128 == 0:
        q_arr = qkv3
        q_spec = pl.BlockSpec((None, tq, gq),
                              lambda bg, qi, kb: (bg // n_kv, qi, bg % n_kv))
    else:
        q_arr = qkv3[:, :, :qw].reshape(B, S, n_kv, gq)
        q_spec = pl.BlockSpec((None, tq, None, gq),
                              lambda bg, qi, kb: (bg // n_kv, qi, bg % n_kv, 0))

    cos_s = prep["cos_full"][:S]                # (S, head_dim)
    sin_s = prep["sin_signed"][:S]

    def kv_idx(bg, qi, kb):
        # Clamp future key blocks to the last causally relevant one so the
        # revisited-block DMA is elided; compute is skipped in-kernel.
        last = ((qi + 1) * tq - 1) // tk
        return (bg // n_kv, jnp.minimum(kb, last), bg % n_kv, 0)

    def rope_k_idx(bg, qi, kb):
        last = ((qi + 1) * tq - 1) // tk
        return (jnp.minimum(kb, last), 0)

    kernel = functools.partial(_flash_attn_kernel, scale=scale, n_rep=n_rep,
                               head_dim=head_dim, tq=tq, tk=tk,
                               compute_dtype=compute_dtype)
    attn = pl.pallas_call(
        kernel,
        out_shape=jax.ShapeDtypeStruct((B, S, qw), compute_dtype),
        grid=(B * n_kv, S // tq, S // tk),
        in_specs=[
            q_spec,
            pl.BlockSpec((None, tk, None, head_dim), kv_idx),
            pl.BlockSpec((None, tk, None, head_dim), kv_idx),
            pl.BlockSpec((tq, head_dim), lambda bg, qi, kb: (qi, 0)),
            pl.BlockSpec((tq, head_dim), lambda bg, qi, kb: (qi, 0)),
            pl.BlockSpec((tk, head_dim), rope_k_idx),
            pl.BlockSpec((tk, head_dim), rope_k_idx),
        ],
        # lane-dense output: (tq, n_rep*head_dim) slab per (batch, kv-group)
        out_specs=pl.BlockSpec((None, tq, gq),
                               lambda bg, qi, kb: (bg // n_kv, qi, bg % n_kv)),
        scratch_shapes=[pltpu.VMEM((tq, gq), compute_dtype),      # rotated+scaled Q
                        pltpu.VMEM((n_rep, tq, 1), jnp.float32),  # m
                        pltpu.VMEM((n_rep, tq, 1), jnp.float32),  # l
                        pltpu.VMEM((tq, gq), jnp.float32)],       # acc
        compiler_params=pltpu.CompilerParams(
            dimension_semantics=("parallel", "parallel", "arbitrary")),
    )(q_arr, xk, xv, cos_s, sin_s, cos_s, sin_s)

    # attention output is already (B, S, n_heads*head_dim): feed wo directly.
    y = pallas_matmul(attn.reshape(B * S, qw), prep["wo_t"],
                      out_dtype=jnp.float32)
    return y.reshape(B, S, dim)


# --------------------------- pure-JAX reference -----------------------------

def ref_forward(x, params, freqs_cis, mask, *, n_heads, n_kv_heads):
    B, S, dim = x.shape
    head_dim = dim // n_heads
    n_rep = n_heads // n_kv_heads
    xq = (x @ params["wq"].T).reshape(B, S, n_heads, head_dim)
    xk = (x @ params["wk"].T).reshape(B, S, n_kv_heads, head_dim)
    xv = (x @ params["wv"].T).reshape(B, S, n_kv_heads, head_dim)

    xq_c = jax.lax.complex(xq[..., 0::2], xq[..., 1::2])
    xk_c = jax.lax.complex(xk[..., 0::2], xk[..., 1::2])
    f = freqs_cis[:S][None, :, None, :]

    def to_real(c):
        return jnp.stack([jnp.real(c), jnp.imag(c)], axis=-1).reshape(
            c.shape[:-1] + (2 * c.shape[-1],))

    xq = to_real(xq_c * f)
    xk = to_real(xk_c * f)

    def rep(t):  # torch.repeat_interleave(dim=2)
        return t if n_rep == 1 else jnp.repeat(t, n_rep, axis=2)

    keys, values = rep(xk), rep(xv)
    xq = jnp.transpose(xq, (0, 2, 1, 3))
    keys = jnp.transpose(keys, (0, 2, 1, 3))
    values = jnp.transpose(values, (0, 2, 1, 3))
    scores = jnp.einsum("bhqd,bhkd->bhqk", xq, keys) / math.sqrt(head_dim)
    scores = scores + mask
    scores = jax.nn.softmax(scores, axis=-1)
    out = jnp.einsum("bhqk,bhkd->bhqd", scores, values)
    out = jnp.transpose(out, (0, 2, 1, 3)).reshape(B, S, -1)
    return out @ params["wo"].T


# --------------------------------- main -------------------------------------

if __name__ == "__main__":
    # LlamaConfig-like setup: dim=256, n_heads=4, n_kv_heads=2 (GQA n_rep=2)
    B, S = 2, 8
    dim, n_heads, n_kv_heads, max_seq_len = 256, 4, 2, 16
    head_dim = dim // n_heads

    key = jax.random.PRNGKey(0)
    kx, kq, kk, kv, ko = jax.random.split(key, 5)
    std = 1.0 / math.sqrt(dim)
    x = jax.random.normal(kx, (B, S, dim), jnp.float32)
    params = {
        "wq": jax.random.normal(kq, (n_heads * head_dim, dim), jnp.float32) * std,
        "wk": jax.random.normal(kk, (n_kv_heads * head_dim, dim), jnp.float32) * std,
        "wv": jax.random.normal(kv, (n_kv_heads * head_dim, dim), jnp.float32) * std,
        "wo": jax.random.normal(ko, (dim, n_heads * head_dim), jnp.float32) * std,
    }

    cos, sin, freqs_cis = precompute_freqs(head_dim, max_seq_len)
    mask = jnp.triu(jnp.full((S, S), -jnp.inf, dtype=jnp.float32), k=1)
    ref = ref_forward(x, params, freqs_cis, mask,
                      n_heads=n_heads, n_kv_heads=n_kv_heads)

    # production path: bf16 intermediates / MXU operands, f32 RoPE/softmax/accum
    prep_bf16 = prepare_attention_params(
        params, n_heads=n_heads, n_kv_heads=n_kv_heads,
        max_seq_len=max_seq_len, compute_dtype=jnp.bfloat16)
    out = jax.block_until_ready(attention_forward(x, prep_bf16))
    assert out.shape == (B, S, dim)
    assert jnp.allclose(out, ref, atol=7.5e-2, rtol=7.5e-2), (
        float(jnp.max(jnp.abs(out - ref))))

    # exactness check: identical kernels with f32 operands end-to-end
    prep_f32 = prepare_attention_params(
        params, n_heads=n_heads, n_kv_heads=n_kv_heads,
        max_seq_len=max_seq_len, compute_dtype=jnp.float32)
    out32 = jax.block_until_ready(attention_forward(x, prep_f32))
    assert jnp.allclose(out32, ref, atol=5e-4, rtol=5e-4), (
        float(jnp.max(jnp.abs(out32 - ref))))

    print("KERNEL_OK")
</pallas_src>

<mosaic_0001>
module attributes {stable_mosaic.version = 11 : i64} {
  func.func @_matmul_kernel(%arg0: i32, %arg1: i32, %arg2: i32, %arg3: memref<16x256xbf16, #tpu.memory_space<vmem>>, %arg4: memref<256x512xbf16, #tpu.memory_space<vmem>>, %arg5: memref<16x512xbf16, #tpu.memory_space<vmem>>, %arg6: memref<16x512xf32, #tpu.memory_space<vmem>>) attributes {dimension_semantics = [#tpu.dimension_semantics<parallel>, #tpu.dimension_semantics<parallel>, #tpu.dimension_semantics<arbitrary>], iteration_bounds = array<i64: 1, 1, 1>, scalar_prefetch = 0 : i64, scratch_operands = 1 : i64, tpu.core_type = #tpu.core_type<tc>, window_params = [{transform_indices = @transform_0, window_bounds = array<i64: 16, 256>}, {transform_indices = @transform_1, window_bounds = array<i64: 256, 512>}, {transform_indices = @transform_2, window_bounds = array<i64: 16, 512>}]} {
    %c0_i32 = arith.constant 0 : i32
    %0 = arith.cmpi eq, %arg2, %c0_i32 : i32
    %1 = arith.extui %0 : i1 to i32
    %c0_i32_0 = arith.constant 0 : i32
    %2 = arith.cmpi ne, %1, %c0_i32_0 : i32
    scf.if %2 {
      %cst_10 = arith.constant 0.000000e+00 : f32
      %12 = vector.broadcast %cst_10 : f32 to vector<16x512xf32>
      %c0_11 = arith.constant 0 : index
      %c0_12 = arith.constant 0 : index
      %13 = vector.load %arg6[%c0_11, %c0_12] : memref<16x512xf32, #tpu.memory_space<vmem>>, vector<16x512xf32>
      tpu.vector_store %arg6[%c0_11, %c0_12], %12 {strides = array<i32>} : memref<16x512xf32, #tpu.memory_space<vmem>>, vector<16x512xf32>,
    } else {
    }
    %c0 = arith.constant 0 : index
    %c0_1 = arith.constant 0 : index
    %3 = vector.load %arg6[%c0, %c0_1] : memref<16x512xf32, #tpu.memory_space<vmem>>, vector<16x512xf32>
    %c0_2 = arith.constant 0 : index
    %c0_3 = arith.constant 0 : index
    %4 = vector.load %arg3[%c0_2, %c0_3] : memref<16x256xbf16, #tpu.memory_space<vmem>>, vector<16x256xbf16>
    %c0_4 = arith.constant 0 : index
    %c0_5 = arith.constant 0 : index
    %5 = vector.load %arg4[%c0_4, %c0_5] : memref<256x512xbf16, #tpu.memory_space<vmem>>, vector<256x512xbf16>
    %cst = arith.constant dense<0.000000e+00> : vector<16x512xf32>
    %6 = tpu.matmul %4, %5, %cst {dimension_numbers = #tpu.dot_dimension_numbers<[1], [0], [0], [1], [0, 0, 1, 1], [], []>} : vector<16x256xbf16>, vector<256x512xbf16>, vector<16x512xf32> -> vector<16x512xf32>
    %7 = arith.addf %3, %6 : vector<16x512xf32>
    %c0_6 = arith.constant 0 : index
    %c0_7 = arith.constant 0 : index
    %8 = vector.load %arg6[%c0_6, %c0_7] : memref<16x512xf32, #tpu.memory_space<vmem>>, vector<16x512xf32>
    tpu.vector_store %arg6[%c0_6, %c0_7], %7 {strides = array<i32>} : memref<16x512xf32, #tpu.memory_space<vmem>>, vector<16x512xf32>,
    %c0_i32_8 = arith.constant 0 : i32
    %9 = arith.cmpi eq, %arg2, %c0_i32_8 : i32
    %10 = arith.extui %9 : i1 to i32
    %c0_i32_9 = arith.constant 0 : i32
    %11 = arith.cmpi ne, %10, %c0_i32_9 : i32
    scf.if %11 {
      %c0_10 = arith.constant 0 : index
      %c0_11 = arith.constant 0 : index
      %12 = vector.load %arg6[%c0_10, %c0_11] : memref<16x512xf32, #tpu.memory_space<vmem>>, vector<16x512xf32>
      %13 = arith.truncf %12 : vector<16x512xf32> to vector<16x512xbf16>
      %c0_12 = arith.constant 0 : index
      %c0_13 = arith.constant 0 : index
      %14 = vector.load %arg5[%c0_12, %c0_13] : memref<16x512xbf16, #tpu.memory_space<vmem>>, vector<16x512xbf16>
      tpu.vector_store %arg5[%c0_12, %c0_13], %13 {strides = array<i32>} : memref<16x512xbf16, #tpu.memory_space<vmem>>, vector<16x512xbf16>,
    } else {
    }
    return
  }
  func.func @transform_0(%arg0: i32, %arg1: i32, %arg2: i32) -> (i32, i32) {
    %c0_i32 = arith.constant 0 : i32
    return %arg0, %arg2 : i32, i32
  }
  func.func @transform_1(%arg0: i32, %arg1: i32, %arg2: i32) -> (i32, i32) {
    %c0_i32 = arith.constant 0 : i32
    return %arg2, %arg1 : i32, i32
  }
  func.func @transform_2(%arg0: i32, %arg1: i32, %arg2: i32) -> (i32, i32) {
    %c0_i32 = arith.constant 0 : i32
    return %arg0, %arg1 : i32, i32
  }
}

</mosaic_0001>

<bundles_post_ra>
// kernel: tpu_custom_call.1
= control target key start
LH: loop header
LB: loop body
LE: loop exit
PB: predicated region body
PF: predicated region fallthrough
CT: control target
= control target key end

     0   :  { %7 = vsyncpa [#allocation4], 0  ;;  %s931_s0 = inlined_call_operand.hbm [shape: bf16[16,256], index: 0, kind: input, shape index: {}]   ;;  %s932_s1 = inlined_call_operand.hbm [shape: bf16[256,512], index: 1, kind: input, shape index: {}]   ;;  %s933_s2 = inlined_call_operand.hbm [shape: bf16[16,512], index: 2, kind: output, shape index: {}]  }
   0x1   :  { %8 = vsyncpa [#allocation7], 0 }
   0x2   :  { %9 = vsyncpa [#allocation5], 0  ;;  %s867_s9 = smov [#allocation3]   ;;  %s795_s13 = scalar_lea.hbm %s931_s0, 256 }
   0x3   :  { %s15_s10 = sshll.u32 %s867_s9, 4  ;;  %p796_p0 = scmp.ne.s32.totalorder %s931_s0, %s795_s13  ;;  %s16_s10 = int_to_ptr.vmem [resolvable:$true] %s15_s10 }
   0x4   :  { %p799_p1 = scmp.lt.u32.totalorder %s795_s13, %s931_s0 }
   0x6   :  { %p801_p2 = pnand %p799_p1, %p796_p0 }
   0x8   :  { %804 = shalt.err (!%p801_p2)
}
   0x9   :  { %s805_s18 = scalar_lea.vmem %s16_s10, 256  ;;  %p810_p4 = scmp.lt.s32.totalorder %s16_s10, %s16_s10 }
   0xa   :  { %p806_p3 = scmp.ne.s32.totalorder %s16_s10, %s805_s18  ;;  %p811_p5 = scmp.lt.s32.totalorder %s805_s18, %s805_s18 }
   0xc   :  { %p812_p6 = por %p811_p5, %p810_p4 }
   0xe   :  { %p813_p7 = pnand %p812_p6, %p806_p3 }
  0x10   :  { %816 = shalt.err (!%p813_p7)
}
  0x11   :  { %s868_s19 = smov 128   ;;  %s869_s20 = smov 8  }
  0x12   :  { %21 = dma.hbm_to_vmem [thread:$0]  %s931_s0, 256, %s16_s10, [#allocation4], %s868_s19, %s868_s19, %s869_s20  }
  0x13   :  { %s870_s23 = smov [#allocation6]   ;;  %s817_s27 = scalar_lea.hbm %s932_s1, 8192 }
  0x14   :  { %s27_s24 = sshll.u32 %s870_s23, 4  ;;  %p818_p8 = scmp.ne.s32.totalorder %s932_s1, %s817_s27  ;;  %s28_s24 = int_to_ptr.vmem [resolvable:$true] %s27_s24 }
  0x15   :  { %p821_p9 = scmp.lt.u32.totalorder %s817_s27, %s932_s1 }
  0x17   :  { %p823_p10 = pnand %p821_p9, %p818_p8 }
  0x19   :  { %826 = shalt.err (!%p823_p10)
}
  0x1a   :  { %s827_s4 = scalar_lea.vmem %s28_s24, 8192  ;;  %p832_p12 = scmp.lt.s32.totalorder %s28_s24, %s28_s24 }
  0x1b   :  { %p828_p11 = scmp.ne.s32.totalorder %s28_s24, %s827_s4  ;;  %p833_p13 = scmp.lt.s32.totalorder %s827_s4, %s827_s4 }
  0x1d   :  { %p834_p0 = por %p833_p13, %p832_p12 }
  0x1f   :  { %p835_p1 = pnand %p834_p0, %p828_p11 }
  0x21   :  { %838 = shalt.err (!%p835_p1)
}
  0x22   :  { %s871_s0 = smov 256   ;;  %s872_s5 = smov 16  }
  0x23   :  { %33 = dma.hbm_to_vmem [thread:$0]  %s932_s1, 8192, %s28_s24, [#allocation7], %s871_s0, %s871_s0, %s872_s5  }
  0x24   :  { %861 = dma.done.wait [#allocation4], 256  }
  0x25   :  { %862 = vsyncadd [#allocation4], 4294967040 }
  0x26   :  { %863 = dma.done.wait [#allocation7], 8192  }
  0x27   :  { %864 = vsyncadd [#allocation7], 4294959104  ;;  %v696_v0 = vld [vmem:[#allocation6 + $0x4] ss:$16 sps:$4 sm:$0xff]   ;;  %v698_v1 = vld [vmem:[#allocation6 + $0xc] ss:$16 sps:$4 sm:$0xff]  }
  0x28   :  { %456 = vmatprep.subr.bf16.mxu0 %v696_v0  ;;  %v700_v2 = vld [vmem:[#allocation6] ss:$16 sps:$4 sm:$0xff]   ;;  %v701_v3 = vld [vmem:[#allocation6 + $0x8] ss:$16 sps:$4 sm:$0xff]   ;;  %499 = vmatprep.subr.bf16.mxu1 %v698_v1  ;;  %v702_v4 = vld [vmem:[#allocation6 + $0x24] ss:$16 sps:$4 sm:$0xff]  }
  0x29   :  { %457 = vmatpush1.bf16.msra.mxu0 %v700_v2  ;;  %500 = vmatpush1.bf16.msra.mxu1 %v701_v3  ;;  %v704_v5 = vld [vmem:[#allocation6 + $0x2c] ss:$16 sps:$4 sm:$0xff]   ;;  %v706_v6 = vld [vmem:[#allocation6 + $0x20] ss:$16 sps:$4 sm:$0xff]   ;;  %v707_v7 = vld [vmem:[#allocation6 + $0x28] ss:$16 sps:$4 sm:$0xff]  }
  0x2a   :  { %458 = vmatprep.subr.bf16.mxu0 %v702_v4  ;;  %501 = vmatprep.subr.bf16.mxu1 %v704_v5  ;;  %v708_v8 = vld [vmem:[#allocation6 + $0x44] ss:$16 sps:$4 sm:$0xff]   ;;  %v710_v9 = vld [vmem:[#allocation6 + $0x4c] ss:$16 sps:$4 sm:$0xff]   ;;  %v712_v10 = vld [vmem:[#allocation6 + $0x40] ss:$16 sps:$4 sm:$0xff]  }
  0x2b   :  { %v713_v11 = vld [vmem:[#allocation6 + $0x48] ss:$16 sps:$4 sm:$0xff]   ;;  %v714_v12 = vld [vmem:[#allocation6 + $0x64] ss:$16 sps:$4 sm:$0xff]   ;;  %v716_v13 = vld [vmem:[#allocation6 + $0x6c] ss:$16 sps:$4 sm:$0xff]  }
  0x2c   :  { %v718_v14 = vld [vmem:[#allocation6 + $0x60] ss:$16 sps:$4 sm:$0xff]   ;;  %v719_v15 = vld [vmem:[#allocation6 + $0x68] ss:$16 sps:$4 sm:$0xff]   ;;  %v720_v16 = vld [vmem:[#allocation6 + $0x84] ss:$16 sps:$4 sm:$0xff]  }
  0x2d   :  { %459 = vmatpush1.bf16.msra.mxu0 %v706_v6  ;;  %502 = vmatpush1.bf16.msra.mxu1 %v707_v7  ;;  %v722_v17 = vld [vmem:[#allocation6 + $0x8c] ss:$16 sps:$4 sm:$0xff]   ;;  %v724_v18 = vld [vmem:[#allocation6 + $0x80] ss:$16 sps:$4 sm:$0xff]   ;;  %v725_v19 = vld [vmem:[#allocation6 + $0x88] ss:$16 sps:$4 sm:$0xff]  }
  0x2e   :  { %460 = vmatprep.subr.bf16.mxu0 %v708_v8  ;;  %503 = vmatprep.subr.bf16.mxu1 %v710_v9  ;;  %v726_v20 = vld [vmem:[#allocation6 + $0xa4] ss:$16 sps:$4 sm:$0xff]   ;;  %v728_v21 = vld [vmem:[#allocation6 + $0xac] ss:$16 sps:$4 sm:$0xff]   ;;  %v730_v22 = vld [vmem:[#allocation6 + $0xa0] ss:$16 sps:$4 sm:$0xff]  }
  0x2f   :  { %v731_v23 = vld [vmem:[#allocation6 + $0xa8] ss:$16 sps:$4 sm:$0xff]   ;;  %v732_v24 = vld [vmem:[#allocation6 + $0xc4] ss:$16 sps:$4 sm:$0xff]   ;;  %v734_v25 = vld [vmem:[#allocation6 + $0xcc] ss:$16 sps:$4 sm:$0xff]  }
  0x30   :  { %v736_v26 = vld [vmem:[#allocation6 + $0xc0] ss:$16 sps:$4 sm:$0xff]   ;;  %v737_v27 = vld [vmem:[#allocation6 + $0xc8] ss:$16 sps:$4 sm:$0xff]   ;;  %v738_v28 = vld [vmem:[#allocation6 + $0xe4] ss:$16 sps:$4 sm:$0xff]  }
  0x31   :  { %461 = vmatpush1.bf16.msra.mxu0 %v712_v10  ;;  %504 = vmatpush1.bf16.msra.mxu1 %v713_v11  ;;  %v740_v29 = vld [vmem:[#allocation6 + $0xec] ss:$16 sps:$4 sm:$0xff]   ;;  %v742_v30 = vld [vmem:[#allocation6 + $0xe0] ss:$16 sps:$4 sm:$0xff]   ;;  %v743_v31 = vld [vmem:[#allocation6 + $0xe8] ss:$16 sps:$4 sm:$0xff]  }
  0x32   :  { %462 = vmatprep.subr.bf16.mxu0 %v714_v12  ;;  %505 = vmatprep.subr.bf16.mxu1 %v716_v13  ;;  %v744_v32 = vld [vmem:[#allocation6 + $0x104] ss:$16 sps:$4 sm:$0xff]   ;;  %v746_v33 = vld [vmem:[#allocation6 + $0x10c] ss:$16 sps:$4 sm:$0xff]   ;;  %v748_v34 = vld [vmem:[#allocation6 + $0x100] ss:$16 sps:$4 sm:$0xff]  }
  0x33   :  { %v749_v35 = vld [vmem:[#allocation6 + $0x108] ss:$16 sps:$4 sm:$0xff]   ;;  %v750_v36 = vld [vmem:[#allocation6 + $0x124] ss:$16 sps:$4 sm:$0xff]   ;;  %v752_v37 = vld [vmem:[#allocation6 + $0x12c] ss:$16 sps:$4 sm:$0xff]  }
  0x34   :  { %v754_v38 = vld [vmem:[#allocation6 + $0x120] ss:$16 sps:$4 sm:$0xff]   ;;  %v755_v39 = vld [vmem:[#allocation6 + $0x128] ss:$16 sps:$4 sm:$0xff]   ;;  %v756_v40 = vld [vmem:[#allocation6 + $0x144] ss:$16 sps:$4 sm:$0xff]  }
  0x35   :  { %463 = vmatpush1.bf16.msra.mxu0 %v718_v14  ;;  %506 = vmatpush1.bf16.msra.mxu1 %v719_v15  ;;  %v758_v41 = vld [vmem:[#allocation6 + $0x14c] ss:$16 sps:$4 sm:$0xff]   ;;  %v760_v42 = vld [vmem:[#allocation6 + $0x140] ss:$16 sps:$4 sm:$0xff]   ;;  %v761_v43 = vld [vmem:[#allocation6 + $0x148] ss:$16 sps:$4 sm:$0xff]  }
  0x36   :  { %464 = vmatprep.subr.bf16.mxu0 %v720_v16  ;;  %507 = vmatprep.subr.bf16.mxu1 %v722_v17  ;;  %v762_v44 = vld [vmem:[#allocation6 + $0x164] ss:$16 sps:$4 sm:$0xff]   ;;  %v764_v45 = vld [vmem:[#allocation6 + $0x16c] ss:$16 sps:$4 sm:$0xff]   ;;  %v766_v47 = vld [vmem:[#allocation6 + $0x160] ss:$16 sps:$4 sm:$0xff]  }
  0x37   :  { %v794_v46 = vld [vmem:[#allocation3 + $0x4] ss:$8 sps:$4 sm:$0xff]   ;;  %v767_v48 = vld [vmem:[#allocation6 + $0x168] ss:$16 sps:$4 sm:$0xff]   ;;  %v772_v51 = vld [vmem:[#allocation6 + $0x180] ss:$16 sps:$4 sm:$0xff]  }
  0x38   :  { %v768_v49 = vld [vmem:[#allocation6 + $0x184] ss:$16 sps:$4 sm:$0xff]   ;;  %v770_v50 = vld [vmem:[#allocation6 + $0x18c] ss:$16 sps:$4 sm:$0xff]   ;;  %488 = vmatprep.mubr.bf16.mxu0 %v794_v46  ;;  %531 = vmatprep.mubr.bf16.mxu1 %v794_v46  ;;  %v773_v52 = vld [vmem:[#allocation6 + $0x188] ss:$16 sps:$4 sm:$0xff]  }
  0x39   :  { %465 = vmatpush1.bf16.msra.mxu0 %v724_v18  ;;  %508 = vmatpush1.bf16.msra.mxu1 %v725_v19  ;;  %v774_v53 = vld [vmem:[#allocation6 + $0x1a4] ss:$16 sps:$4 sm:$0xff]   ;;  %v776_v54 = vld [vmem:[#allocation6 + $0x1ac] ss:$16 sps:$4 sm:$0xff]   ;;  %v778_v55 = vld [vmem:[#allocation6 + $0x1a0] ss:$16 sps:$4 sm:$0xff]  }
  0x3a   :  { %466 = vmatprep.subr.bf16.mxu0 %v726_v20  ;;  %509 = vmatprep.subr.bf16.mxu1 %v728_v21  ;;  %v779_v56 = vld [vmem:[#allocation6 + $0x1a8] ss:$16 sps:$4 sm:$0xff]   ;;  %v780_v57 = vld [vmem:[#allocation6 + $0x1c4] ss:$16 sps:$4 sm:$0xff]   ;;  %v782_v58 = vld [vmem:[#allocation6 + $0x1cc] ss:$16 sps:$4 sm:$0xff]  }
  0x3b   :  { %v784_v59 = vld [vmem:[#allocation6 + $0x1c0] ss:$16 sps:$4 sm:$0xff]   ;;  %v785_v60 = vld [vmem:[#allocation6 + $0x1c8] ss:$16 sps:$4 sm:$0xff]   ;;  %v786_v61 = vld [vmem:[#allocation6 + $0x1e4] ss:$16 sps:$4 sm:$0xff]  }
  0x3c   :  { %v788_v62 = vld [vmem:[#allocation6 + $0x1ec] ss:$16 sps:$4 sm:$0xff]   ;;  %v790_v63 = vld [vmem:[#allocation6 + $0x1e0] ss:$16 sps:$4 sm:$0xff]   ;;  %v791_v0 = vld [vmem:[#allocation6 + $0x1e8] ss:$16 sps:$4 sm:$0xff]  }
  0x3d   :  { %467 = vmatpush1.bf16.msra.mxu0 %v730_v22  ;;  %510 = vmatpush1.bf16.msra.mxu1 %v731_v23  ;;  %v792_v1 = vld [vmem:[#allocation3] ss:$8 sps:$4 sm:$0xff]   ;;  %s873_s1 = smov [#allocation8]  }
  0x3e   :  { %468 = vmatprep.subr.bf16.mxu0 %v732_v24  ;;  %511 = vmatprep.subr.bf16.mxu1 %v734_v25  ;;  %s602_s8 = sshll.u32 %s873_s1, 4  ;;  %s603_s8 = int_to_ptr.vmem [resolvable:$true] %s602_s8 }
  0x3f   :  { %s839_s9 = scalar_lea.vmem %s603_s8, 512  ;;  %p844_p3 = scmp.lt.s32.totalorder %s603_s8, %s603_s8 }
  0x40   :  { %p840_p2 = scmp.ne.s32.totalorder %s603_s8, %s839_s9  ;;  %p845_p4 = scmp.lt.s32.totalorder %s839_s9, %s839_s9 }
  0x41   :  { %469 = vmatpush1.bf16.msra.mxu0 %v736_v26  ;;  %512 = vmatpush1.bf16.msra.mxu1 %v737_v27 }
  0x42   :  { %470 = vmatprep.subr.bf16.mxu0 %v738_v28  ;;  %513 = vmatprep.subr.bf16.mxu1 %v740_v29  ;;  %p846_p5 = por %p845_p4, %p844_p3 }
  0x44   :  { %p847_p6 = pnand %p846_p5, %p840_p2 }
  0x45   :  { %471 = vmatpush1.bf16.msra.mxu0 %v742_v30  ;;  %514 = vmatpush1.bf16.msra.mxu1 %v743_v31 }
  0x46   :  { %472 = vmatprep.subr.bf16.mxu0 %v744_v32  ;;  %515 = vmatprep.subr.bf16.mxu1 %v746_v33 }
  0x49   :  { %473 = vmatpush1.bf16.msra.mxu0 %v748_v34  ;;  %516 = vmatpush1.bf16.msra.mxu1 %v749_v35 }
  0x4a   :  { %474 = vmatprep.subr.bf16.mxu0 %v750_v36  ;;  %517 = vmatprep.subr.bf16.mxu1 %v752_v37 }
  0x4d   :  { %475 = vmatpush1.bf16.msra.mxu0 %v754_v38  ;;  %518 = vmatpush1.bf16.msra.mxu1 %v755_v39 }
  0x4e   :  { %476 = vmatprep.subr.bf16.mxu0 %v756_v40  ;;  %519 = vmatprep.subr.bf16.mxu1 %v758_v41 }
  0x51   :  { %477 = vmatpush1.bf16.msra.mxu0 %v760_v42  ;;  %520 = vmatpush1.bf16.msra.mxu1 %v761_v43 }
  0x52   :  { %478 = vmatprep.subr.bf16.mxu0 %v762_v44  ;;  %521 = vmatprep.subr.bf16.mxu1 %v764_v45 }
  0x55   :  { %479 = vmatpush1.bf16.msra.mxu0 %v766_v47  ;;  %522 = vmatpush1.bf16.msra.mxu1 %v767_v48 }
  0x56   :  { %480 = vmatprep.subr.bf16.mxu0 %v768_v49  ;;  %523 = vmatprep.subr.bf16.mxu1 %v770_v50 }
  0x59   :  { %481 = vmatpush1.bf16.msra.mxu0 %v772_v51  ;;  %524 = vmatpush1.bf16.msra.mxu1 %v773_v52 }
  0x5a   :  { %482 = vmatprep.subr.bf16.mxu0 %v774_v53  ;;  %525 = vmatprep.subr.bf16.mxu1 %v776_v54 }
  0x5d   :  { %483 = vmatpush1.bf16.msra.mxu0 %v778_v55  ;;  %526 = vmatpush1.bf16.msra.mxu1 %v779_v56 }
  0x5e   :  { %484 = vmatprep.subr.bf16.mxu0 %v780_v57  ;;  %527 = vmatprep.subr.bf16.mxu1 %v782_v58 }
  0x61   :  { %485 = vmatpush1.bf16.msra.mxu0 %v784_v59  ;;  %528 = vmatpush1.bf16.msra.mxu1 %v785_v60 }
  0x62   :  { %486 = vmatprep.subr.bf16.mxu0 %v786_v61  ;;  %529 = vmatprep.subr.bf16.mxu1 %v788_v62 }
  0x65   :  { %487 = vmatpush1.bf16.msra.mxu0 %v790_v63  ;;  %530 = vmatpush1.bf16.msra.mxu1 %v791_v0 }
  0x68   :  { %489 = vmatmul.mubr.bf16.vlgmr.msra.gmra.mrb[0].mxu0 %v792_v1  ;;  %532 = vmatmul.mubr.bf16.vlgmr.msra.gmra.mrb[0].mxu1 %v792_v1 }
 0x13b   :  { %v490_v2 = vpop.f32.mrb[0].mxu0  ;;  %v533_v3 = vpop.f32.mrb[0].mxu1 }
 0x13c   :  { %v492_v4 = vpop.f32.mrb[1].mxu0  ;;  %v535_v5 = vpop.f32.mrb[1].mxu1 }
 0x13d   :  { %v685_v6 = vpack.c.bf16 %v492_v4, %v490_v2  ;;  %v686_v7 = vpack.c.bf16 %v535_v5, %v533_v3  ;;  %v494_v8 = vpop.f32.mrb[2].mxu0  ;;  %v537_v9 = vpop.f32.mrb[2].mxu1 }
 0x13e   :  { %v496_v10 = vpop.f32.mrb[3].mxu0  ;;  %v539_v11 = vpop.f32.mrb[3].mxu1 }
 0x13f   :  { %593 = vst [vmem:[#allocation8] sm:$0xff] %v685_v6  ;;  %594 = vst [vmem:[#allocation8 + $0x8] sm:$0xff] %v686_v7  ;;  %v687_v12 = vpack.c.bf16 %v496_v10, %v494_v8  ;;  %v688_v13 = vpack.c.bf16 %v539_v11, %v537_v9 }
 0x141   :  { %595 = vst [vmem:[#allocation8 + $0x10] sm:$0xff] %v687_v12  ;;  %596 = vst [vmem:[#allocation8 + $0x18] sm:$0xff] %v688_v13 }
 0x142   :  { %850 = shalt.err (!%p847_p6)
}
 0x143   :  { %s851_s12 = scalar_lea.hbm %s933_s2, 512 }
 0x144   :  { %p852_p7 = scmp.ne.s32.totalorder %s933_s2, %s851_s12  ;;  %p855_p8 = scmp.lt.u32.totalorder %s851_s12, %s933_s2 }
 0x146   :  { %p857_p9 = pnand %p855_p8, %p852_p7 }
 0x148   :  { %860 = shalt.err (!%p857_p9)
}
 0x149   :  { %608 = dma.vmem_to_hbm [thread:$0]  %s603_s8, 512, %s933_s2, [#allocation5], %s871_s0, %s871_s0, %s872_s5  }
 0x14a   :  { %865 = dma.done.wait [#allocation5], 512  }
 0x14b   :  { %866 = vsyncadd [#allocation5], 4294966784 }
 0x14c   :  { %612 = vsyncpa [#allocation4], 1 }
 0x14d   :  { %613 = vsyncpa [#allocation7], 1 }
 0x14e   :  { %614 = vsyncpa [#allocation5], 1 }

</bundles_post_ra>
